<compile_context>
chip_gen: v6e
topology: v6e:2x2x1
jax: 0.10.0
libtpu: 0.0.40
codegen_flags: <defaults>
</compile_context>

<pallas_src>
import functools
import math

import jax
import jax.numpy as jnp
from jax.experimental import pallas as pl
from jax.experimental.pallas import tpu as pltpu

IN_FEATURE = 2
OUT_FEATURE = 10


def arc_margin_kernel(label_ref, x_ref, w_ref, loss_ref, out_ref,
                      *, cos_m, sin_m, th, mm, s, inv_b):
    # label_ref: (B,) int32, scalar-prefetched into SMEM (no VMEM tile DMA).
    x = x_ref[...].astype(jnp.float32)        # (B, D)
    w = w_ref[...].astype(jnp.float32)        # (D, C)

    b, d = x.shape
    _, c = w.shape

    # K=D contraction on the VPU (no MXU latency for a 2-deep contraction),
    # with squared norms accumulated in the same unroll.
    x0 = x[:, 0:1]                            # (B, 1)
    w0 = w[0:1, :]                            # (1, C)
    raw = x0 * w0                             # (B, C)
    row_ss = x0 * x0                          # (B, 1)
    col_ss = w0 * w0                          # (1, C)
    for k in range(1, d):
        xk = x[:, k:k + 1]
        wk = w[k:k + 1, :]
        raw = raw + xk * wk
        row_ss = row_ss + xk * xk
        col_ss = col_ss + wk * wk

    # F.normalize uses x / max(||x||, 1e-12); fold both normalizations into
    # the result: 1/max(||.||, 1e-12) == rsqrt(max(||.||^2, 1e-24)).
    # rsqrt lands on the EUP slot (VALU stays free).
    inv_x = jax.lax.rsqrt(jnp.maximum(row_ss, 1e-24))   # (B, 1)
    inv_w = jax.lax.rsqrt(jnp.maximum(col_ss, 1e-24))   # (1, C)
    cosine = raw * inv_x * inv_w                        # (B, C)

    # Arc-margin transform.  The sqrt argument is clamped at 0 to avoid NaN
    # when |cosine| overshoots 1.0 by roundoff (the unclamped PyTorch
    # reference would produce NaN in exactly those corner cases).
    sine = jnp.sqrt(jnp.maximum(1.0 - cosine * cosine, 0.0))
    phi = cosine * cos_m - sine * sin_m
    phi = jnp.where(cosine - th > 0, phi, cosine - mm)

    # One-hot mask from SMEM scalar reads, unrolled over B (cheap VPU
    # compares on a single vreg; replaces the old (B,1) int32 VMEM input).
    row_ids = jax.lax.broadcasted_iota(jnp.int32, (b, c), 0)
    col_ids = jax.lax.broadcasted_iota(jnp.int32, (b, c), 1)
    is_target = (row_ids == 0) & (col_ids == label_ref[0])
    for i in range(1, b):
        is_target = is_target | ((row_ids == i) & (col_ids == label_ref[i]))

    # one_hot*phi + (1-one_hot)*cosine  ->  single VPU select.
    # NOTE(scaling): if OUT_FEATURE grows, pad/tile C to a multiple of 128
    # (>=512) so this store becomes an unmasked lane-dense vst.
    out_ref[...] = jnp.where(is_target, phi, cosine) * s

    # loss = F.cross_entropy(cosine, label), mean reduction, on the *raw*
    # cosine logits exactly as in the reference module.
    # NOTE(scaling): if C is ever gridded, switch to an online logsumexp with
    # running max/sum scratch and a pl.when(last) finalize.
    m_row = jnp.max(cosine, axis=1, keepdims=True)
    lse = m_row + jnp.log(jnp.sum(jnp.exp(cosine - m_row), axis=1,
                                  keepdims=True))
    target_logit = jnp.sum(jnp.where(is_target, cosine, 0.0), axis=1,
                           keepdims=True)
    # Scalar loss goes to SMEM (avoids a padded (8,128) VMEM tile writeback).
    loss_ref[0, 0] = jnp.sum(lse - target_logit) * inv_b


@functools.partial(jax.jit, static_argnames=("s", "m"))
def arc_margin_forward(x, weight, label, s=128.0, m=0.01):
    """Returns (loss, output) matching ArcMarginProduct.forward."""
    b, d = x.shape
    d2, c = weight.shape
    assert d == d2

    cos_m = math.cos(m)
    sin_m = math.sin(m)
    th = math.cos(3.1415926 - m)          # keep the reference's literal pi
    mm = math.sin(3.1415926 - m) * m

    kernel = functools.partial(
        arc_margin_kernel, cos_m=cos_m, sin_m=sin_m, th=th, mm=mm,
        s=float(s), inv_b=1.0 / b)

    # Flat (B,) int32 for the scalar-prefetch path (reshape/astype fuse into
    # this jit; no standalone host-side XLA op).
    label_flat = label.reshape(b).astype(jnp.int32)

    cost = pl.CostEstimate(
        flops=b * c * (2 * d + 14),
        transcendentals=2 * b * c + 2 * b + c,
        bytes_accessed=4 * (b * d + d * c + b * c + b + 1),
    )

    grid_spec = pltpu.PrefetchScalarGridSpec(
        num_scalar_prefetch=1,                # label -> SMEM, no VMEM tile
        grid=(),                              # ungridded: everything fits
        in_specs=[
            pl.BlockSpec(memory_space=pltpu.VMEM),       # x      (B, D)
            pl.BlockSpec(memory_space=pltpu.VMEM),       # weight (D, C)
        ],
        out_specs=(
            pl.BlockSpec(memory_space=pltpu.SMEM),       # scalar loss (1,1)
            pl.BlockSpec(memory_space=pltpu.VMEM),       # scaled logits
        ),
    )

    loss2d, output = pl.pallas_call(
        kernel,
        out_shape=(
            jax.ShapeDtypeStruct((1, 1), jnp.float32),   # loss (SMEM)
            jax.ShapeDtypeStruct((b, c), jnp.float32),   # scaled logits
        ),
        grid_spec=grid_spec,
        cost_estimate=cost,
        # NOTE(scaling): if a grid axis is ever added, mark the independent
        # axis "parallel" via pltpu.CompilerParams(dimension_semantics=...)
        # for v7x's 2 TensorCores, keep the reduction axis "arbitrary" with
        # an accumulator + pl.when finalize, and budget tiles against 64 MiB
        # VMEM (v7x) / 32 MiB default-scoped (vmem_limit_bytes if exceeded).
    )(label_flat, x, weight)
    return loss2d[0, 0], output


def init_weight(key, in_f=IN_FEATURE, out_f=OUT_FEATURE):
    """Deterministic stand-in for:
       xavier_uniform_ -> renorm_(2, 1, 1e-5) -> mul_(1e5)."""
    bound = math.sqrt(6.0 / (in_f + out_f))
    w = jax.random.uniform(key, (in_f, out_f), jnp.float32, -bound, bound)
    # renorm over dim=1 slices (columns), maxnorm=1e-5 (torch adds 1e-7 eps)
    col_norm = jnp.sqrt(jnp.sum(w * w, axis=0, keepdims=True))
    scale = jnp.where(col_norm > 1e-5, 1e-5 / (col_norm + 1e-7), 1.0)
    w = w * scale * 1e5
    return w


if __name__ == "__main__":
    key = jax.random.PRNGKey(0)
    kx, kw, kl = jax.random.split(key, 3)

    B = 8
    x = jax.random.normal(kx, (B, IN_FEATURE), jnp.float32)
    weight = init_weight(kw)
    label = jax.random.randint(kl, (B,), 0, OUT_FEATURE, jnp.int32)

    loss, output = arc_margin_forward(x, weight, label, s=128.0, m=0.01)
    jax.block_until_ready((loss, output))

    assert output.shape == (B, OUT_FEATURE)
    assert loss.shape == ()
    assert bool(jnp.isfinite(loss)) and bool(jnp.all(jnp.isfinite(output)))
    print("KERNEL_OK")
</pallas_src>

<mosaic_0001>
module attributes {stable_mosaic.version = 11 : i64} {
  func.func @arc_margin_kernel(%arg0: memref<8xi32, #tpu.memory_space<smem>>, %arg1: memref<8x2xf32, #tpu.memory_space<vmem>>, %arg2: memref<2x10xf32, #tpu.memory_space<vmem>>, %arg3: memref<1x1xf32, #tpu.memory_space<smem>>, %arg4: memref<8x10xf32, #tpu.memory_space<vmem>>) attributes {dimension_semantics = [], scalar_prefetch = 1 : i64, scratch_operands = 0 : i64, tpu.core_type = #tpu.core_type<tc>} {
    %c0 = arith.constant 0 : index
    %c0_0 = arith.constant 0 : index
    %0 = vector.load %arg1[%c0, %c0_0] : memref<8x2xf32, #tpu.memory_space<vmem>>, vector<8x2xf32>
    %c0_1 = arith.constant 0 : index
    %c0_2 = arith.constant 0 : index
    %1 = vector.load %arg2[%c0_1, %c0_2] : memref<2x10xf32, #tpu.memory_space<vmem>>, vector<2x10xf32>
    %2 = vector.extract_strided_slice %0 {offsets = [0, 0], sizes = [8, 1], strides = [1, 1]} : vector<8x2xf32> to vector<8x1xf32>
    %3 = vector.extract_strided_slice %1 {offsets = [0, 0], sizes = [1, 10], strides = [1, 1]} : vector<2x10xf32> to vector<1x10xf32>
    %4 = vector.broadcast %2 : vector<8x1xf32> to vector<8x10xf32>
    %5 = vector.broadcast %3 : vector<1x10xf32> to vector<8x10xf32>
    %6 = arith.mulf %4, %5 : vector<8x10xf32>
    %7 = arith.mulf %2, %2 : vector<8x1xf32>
    %8 = arith.mulf %3, %3 : vector<1x10xf32>
    %9 = vector.extract_strided_slice %0 {offsets = [0, 1], sizes = [8, 1], strides = [1, 1]} : vector<8x2xf32> to vector<8x1xf32>
    %10 = vector.extract_strided_slice %1 {offsets = [1, 0], sizes = [1, 10], strides = [1, 1]} : vector<2x10xf32> to vector<1x10xf32>
    %11 = vector.broadcast %9 : vector<8x1xf32> to vector<8x10xf32>
    %12 = vector.broadcast %10 : vector<1x10xf32> to vector<8x10xf32>
    %13 = arith.mulf %11, %12 : vector<8x10xf32>
    %14 = arith.addf %6, %13 : vector<8x10xf32>
    %15 = arith.mulf %9, %9 : vector<8x1xf32>
    %16 = arith.addf %7, %15 : vector<8x1xf32>
    %17 = arith.mulf %10, %10 : vector<1x10xf32>
    %18 = arith.addf %8, %17 : vector<1x10xf32>
    %cst = arith.constant 1.000000e-24 : f32
    %19 = vector.broadcast %cst : f32 to vector<8x1xf32>
    %20 = arith.maximumf %16, %19 : vector<8x1xf32>
    %21 = math.rsqrt %20 : vector<8x1xf32>
    %cst_3 = arith.constant 1.000000e-24 : f32
    %22 = vector.broadcast %cst_3 : f32 to vector<1x10xf32>
    %23 = arith.maximumf %18, %22 : vector<1x10xf32>
    %24 = math.rsqrt %23 : vector<1x10xf32>
    %25 = vector.broadcast %21 : vector<8x1xf32> to vector<8x10xf32>
    %26 = arith.mulf %14, %25 : vector<8x10xf32>
    %27 = vector.broadcast %24 : vector<1x10xf32> to vector<8x10xf32>
    %28 = arith.mulf %26, %27 : vector<8x10xf32>
    %29 = arith.mulf %28, %28 : vector<8x10xf32>
    %cst_4 = arith.constant 1.000000e+00 : f32
    %30 = vector.broadcast %cst_4 : f32 to vector<8x10xf32>
    %31 = arith.subf %30, %29 : vector<8x10xf32>
    %cst_5 = arith.constant 0.000000e+00 : f32
    %32 = vector.broadcast %cst_5 : f32 to vector<8x10xf32>
    %33 = arith.maximumf %31, %32 : vector<8x10xf32>
    %34 = math.sqrt %33 : vector<8x10xf32>
    %cst_6 = arith.constant 0.999949991 : f32
    %35 = vector.broadcast %cst_6 : f32 to vector<8x10xf32>
    %36 = arith.mulf %28, %35 : vector<8x10xf32>
    %cst_7 = arith.constant 0.00999983306 : f32
    %37 = vector.broadcast %cst_7 : f32 to vector<8x10xf32>
    %38 = arith.mulf %34, %37 : vector<8x10xf32>
    %39 = arith.subf %36, %38 : vector<8x10xf32>
    %cst_8 = arith.constant -0.999949991 : f32
    %40 = vector.broadcast %cst_8 : f32 to vector<8x10xf32>
    %41 = arith.subf %28, %40 : vector<8x10xf32>
    %cst_9 = arith.constant 0.000000e+00 : f32
    %42 = vector.broadcast %cst_9 : f32 to vector<8x10xf32>
    %43 = arith.cmpf ogt, %41, %42 : vector<8x10xf32>
    %cst_10 = arith.constant 9.99988697E-5 : f32
    %44 = vector.broadcast %cst_10 : f32 to vector<8x10xf32>
    %45 = arith.subf %28, %44 : vector<8x10xf32>
    %46 = arith.select %43, %39, %45 : vector<8x10xi1>, vector<8x10xf32>
    %47 = tpu.iota {dimensions = array<i32: 0>} : vector<8x10xi32>
    %48 = tpu.iota {dimensions = array<i32: 1>} : vector<8x10xi32>
    %c0_i32 = arith.constant 0 : i32
    %49 = vector.broadcast %c0_i32 : i32 to vector<8x10xi32>
    %50 = arith.cmpi eq, %47, %49 : vector<8x10xi32>
    %c0_11 = arith.constant 0 : index
    %51 = memref.load %arg0[%c0_11] : memref<8xi32, #tpu.memory_space<smem>>
    %52 = vector.broadcast %51 : i32 to vector<8x10xi32>
    %53 = arith.cmpi eq, %48, %52 : vector<8x10xi32>
    %54 = arith.andi %50, %53 : vector<8x10xi1>
    %c1_i32 = arith.constant 1 : i32
    %55 = vector.broadcast %c1_i32 : i32 to vector<8x10xi32>
    %56 = arith.cmpi eq, %47, %55 : vector<8x10xi32>
    %c1 = arith.constant 1 : index
    %57 = memref.load %arg0[%c1] : memref<8xi32, #tpu.memory_space<smem>>
    %58 = vector.broadcast %57 : i32 to vector<8x10xi32>
    %59 = arith.cmpi eq, %48, %58 : vector<8x10xi32>
    %60 = arith.andi %56, %59 : vector<8x10xi1>
    %61 = arith.ori %54, %60 : vector<8x10xi1>
    %c2_i32 = arith.constant 2 : i32
    %62 = vector.broadcast %c2_i32 : i32 to vector<8x10xi32>
    %63 = arith.cmpi eq, %47, %62 : vector<8x10xi32>
    %c2 = arith.constant 2 : index
    %64 = memref.load %arg0[%c2] : memref<8xi32, #tpu.memory_space<smem>>
    %65 = vector.broadcast %64 : i32 to vector<8x10xi32>
    %66 = arith.cmpi eq, %48, %65 : vector<8x10xi32>
    %67 = arith.andi %63, %66 : vector<8x10xi1>
    %68 = arith.ori %61, %67 : vector<8x10xi1>
    %c3_i32 = arith.constant 3 : i32
    %69 = vector.broadcast %c3_i32 : i32 to vector<8x10xi32>
    %70 = arith.cmpi eq, %47, %69 : vector<8x10xi32>
    %c3 = arith.constant 3 : index
    %71 = memref.load %arg0[%c3] : memref<8xi32, #tpu.memory_space<smem>>
    %72 = vector.broadcast %71 : i32 to vector<8x10xi32>
    %73 = arith.cmpi eq, %48, %72 : vector<8x10xi32>
    %74 = arith.andi %70, %73 : vector<8x10xi1>
    %75 = arith.ori %68, %74 : vector<8x10xi1>
    %c4_i32 = arith.constant 4 : i32
    %76 = vector.broadcast %c4_i32 : i32 to vector<8x10xi32>
    %77 = arith.cmpi eq, %47, %76 : vector<8x10xi32>
    %c4 = arith.constant 4 : index
    %78 = memref.load %arg0[%c4] : memref<8xi32, #tpu.memory_space<smem>>
    %79 = vector.broadcast %78 : i32 to vector<8x10xi32>
    %80 = arith.cmpi eq, %48, %79 : vector<8x10xi32>
    %81 = arith.andi %77, %80 : vector<8x10xi1>
    %82 = arith.ori %75, %81 : vector<8x10xi1>
    %c5_i32 = arith.constant 5 : i32
    %83 = vector.broadcast %c5_i32 : i32 to vector<8x10xi32>
    %84 = arith.cmpi eq, %47, %83 : vector<8x10xi32>
    %c5 = arith.constant 5 : index
    %85 = memref.load %arg0[%c5] : memref<8xi32, #tpu.memory_space<smem>>
    %86 = vector.broadcast %85 : i32 to vector<8x10xi32>
    %87 = arith.cmpi eq, %48, %86 : vector<8x10xi32>
    %88 = arith.andi %84, %87 : vector<8x10xi1>
    %89 = arith.ori %82, %88 : vector<8x10xi1>
    %c6_i32 = arith.constant 6 : i32
    %90 = vector.broadcast %c6_i32 : i32 to vector<8x10xi32>
    %91 = arith.cmpi eq, %47, %90 : vector<8x10xi32>
    %c6 = arith.constant 6 : index
    %92 = memref.load %arg0[%c6] : memref<8xi32, #tpu.memory_space<smem>>
    %93 = vector.broadcast %92 : i32 to vector<8x10xi32>
    %94 = arith.cmpi eq, %48, %93 : vector<8x10xi32>
    %95 = arith.andi %91, %94 : vector<8x10xi1>
    %96 = arith.ori %89, %95 : vector<8x10xi1>
    %c7_i32 = arith.constant 7 : i32
    %97 = vector.broadcast %c7_i32 : i32 to vector<8x10xi32>
    %98 = arith.cmpi eq, %47, %97 : vector<8x10xi32>
    %c7 = arith.constant 7 : index
    %99 = memref.load %arg0[%c7] : memref<8xi32, #tpu.memory_space<smem>>
    %100 = vector.broadcast %99 : i32 to vector<8x10xi32>
    %101 = arith.cmpi eq, %48, %100 : vector<8x10xi32>
    %102 = arith.andi %98, %101 : vector<8x10xi1>
    %103 = arith.ori %96, %102 : vector<8x10xi1>
    %104 = arith.select %103, %46, %28 : vector<8x10xi1>, vector<8x10xf32>
    %cst_12 = arith.constant 1.280000e+02 : f32
    %105 = vector.broadcast %cst_12 : f32 to vector<8x10xf32>
    %106 = arith.mulf %104, %105 : vector<8x10xf32>
    %c0_13 = arith.constant 0 : index
    %c0_14 = arith.constant 0 : index
    %107 = vector.load %arg4[%c0_13, %c0_14] : memref<8x10xf32, #tpu.memory_space<vmem>>, vector<8x10xf32>
    tpu.vector_store %arg4[%c0_13, %c0_14], %106 {strides = array<i32>} : memref<8x10xf32, #tpu.memory_space<vmem>>, vector<8x10xf32>,
    %cst_15 = arith.constant dense<0xFF800000> : vector<8xf32>
    %108 = vector.multi_reduction <maximumf>, %28, %cst_15 [1] : vector<8x10xf32> to vector<8xf32>
    %109 = vector.shape_cast %108 : vector<8xf32> to vector<8x1xf32>
    %110 = vector.broadcast %109 : vector<8x1xf32> to vector<8x10xf32>
    %111 = arith.subf %28, %110 : vector<8x10xf32>
    %112 = math.exp %111 : vector<8x10xf32>
    %cst_16 = arith.constant dense<0.000000e+00> : vector<8xf32>
    %113 = vector.multi_reduction <add>, %112, %cst_16 [1] : vector<8x10xf32> to vector<8xf32>
    %114 = vector.shape_cast %113 : vector<8xf32> to vector<8x1xf32>
    %115 = math.log %114 : vector<8x1xf32>
    %116 = arith.addf %109, %115 : vector<8x1xf32>
    %cst_17 = arith.constant 0.000000e+00 : f32
    %117 = vector.broadcast %cst_17 : f32 to vector<8x10xf32>
    %118 = arith.select %103, %28, %117 : vector<8x10xi1>, vector<8x10xf32>
    %cst_18 = arith.constant dense<0.000000e+00> : vector<8xf32>
    %119 = vector.multi_reduction <add>, %118, %cst_18 [1] : vector<8x10xf32> to vector<8xf32>
    %120 = vector.shape_cast %119 : vector<8xf32> to vector<8x1xf32>
    %121 = arith.subf %116, %120 : vector<8x1xf32>
    %122 = vector.shape_cast %121 : vector<8x1xf32> to vector<1x8x1xf32>
    %cst_19 = arith.constant dense<0.000000e+00> : vector<1xf32>
    %123 = vector.multi_reduction <add>, %122, %cst_19 [1, 2] : vector<1x8x1xf32> to vector<1xf32>
    %124 = vector.shape_cast %123 : vector<1xf32> to vector<1x1x1xf32>
    %125 = vector.extract %124[0, 0, 0] : f32 from vector<1x1x1xf32>
    %cst_20 = arith.constant 1.250000e-01 : f32
    %126 = arith.mulf %125, %cst_20 : f32
    %c0_21 = arith.constant 0 : index
    %c0_22 = arith.constant 0 : index
    %127 = memref.load %arg3[%c0_21, %c0_22] : memref<1x1xf32, #tpu.memory_space<smem>>
    memref.store %126, %arg3[%c0_21, %c0_22] : memref<1x1xf32, #tpu.memory_space<smem>>
    return
  }
}

</mosaic_0001>

<bundles_post_ra>
// kernel: arc_margin_forward.1
= control target key start
LH: loop header
LB: loop body
LE: loop exit
PB: predicated region body
PF: predicated region fallthrough
CT: control target
= control target key end

     0   :  { %s385_s0 = inlined_call_operand.vmem [shape: s32[8], index: 0, kind: input, shape index: {}]   ;;  %s386_s1 = inlined_call_operand.vmem [shape: f32[8,2], index: 1, kind: input, shape index: {}]   ;;  %s387_s2 = inlined_call_operand.vmem [shape: f32[2,10], index: 2, kind: input, shape index: {}]   ;;  %s388_s3 = inlined_call_operand.hbm [shape: f32[1,1], index: 3, kind: output, shape index: {0}]   ;;  %s389_s4 = inlined_call_operand.hbm [shape: f32[8,10], index: 4, kind: output, shape index: {1}]  }
   0x1   :  { %s10_s17 = sshll.u32 %s385_s0, 4  ;;  %s11_s17 = int_to_ptr.vmem [resolvable:$true] %s10_s17 }
   0x2   :  { %s230_s18 = scalar_lea.vmem %s11_s17, 16  ;;  %p235_p1 = scmp.lt.s32.totalorder %s11_s17, %s11_s17 }
   0x3   :  { %p231_p0 = scmp.ne.s32.totalorder %s11_s17, %s230_s18  ;;  %p236_p2 = scmp.lt.s32.totalorder %s230_s18, %s230_s18 }
   0x5   :  { %p237_p3 = por %p236_p2, %p235_p1 }
   0x7   :  { %p238_p4 = pnand %p237_p3, %p231_p0 }
   0x9   :  { %241 = shalt.err (!%p238_p4)  }
   0xa   :  { %s276_s19 = smov [#allocation3]  }
   0xb   :  { %13 = dma.vmem_to_smem %s11_s17, 16, %s276_s19, [#allocation2] }
   0xc   :  { %270 = dma.done.wait [#allocation2], 16 }
   0xd   :  { %271 = vsyncadd [#allocation2], 4294967280 }
   0xe   :  { %15 = sfence }
   0xf   :  { %16 = vsyncpa [#allocation6], 0  ;;  %v22_v0 = vld [vmem:[%s386_s1] sm:$0xff] }
  0x10   :  { %17 = vsyncpa [#allocation5], 0  ;;  %v34_v1 = vmul.f32 %v22_v0, %v22_v0  ;;  %v277_v2 = vmov 1   ;;  %v278_v3 = vmov 0   ;;  %s279_s0 = smov 127   ;;  %v29_v12 = vlaneseq  ;;  %s92_s1 = sld [smem:[#allocation3]] }
  0x11   :  { %218 = vset.pattern.permute.xlu1 %v277_v2  ;;  %217 = vset.pattern.permute.xlu0 %v278_v3  ;;  %v23_v8 = vld [vmem:[%s387_s2] sm:$0x3]  ;;  %s202_s24 = sld [smem:[#allocation3 + $0x1]]  ;;  %vm140_vm0 = vcmask 80896   ;;  %s280_s30 = smov [#allocation7]  }
  0x12   :  { %37 = vperm.xlu1 %218, %v22_v0   ;;  %47 = vrot.lane.b32.xlu0 %v34_v1, %s279_s0  ;;  %v35_v9 = vmul.f32 %v23_v8, %v23_v8  ;;  %v316_v14 = vshrl.u32 %v29_v12, 7  ;;  %s203_s2 = sld [smem:[#allocation3 + $0x2]]  ;;  %v90_v25 = vand.u32 127, %v29_v12  ;;  %s187_s5 = sshll.u32 %s280_s30, 4  ;;  %s188_s5 = int_to_ptr.vmem [resolvable:$true] %s187_s5 }
  0x13   :  { %s204_s25 = sld [smem:[#allocation3 + $0x3]]  ;;  %s242_s6 = scalar_lea.vmem %s188_s5, 128 }
  0x14   :  { %v52_v10 = vrot.slane %v35_v9, 1  ;;  %v42_v15 = vsub.s32 1, %v316_v14  ;;  %v31_v16 = vsub.s32 0, %v316_v14  ;;  %vm91_vm1 = vcmp.eq.s32.totalorder %v316_v14, 0  ;;  %s205_s26 = sld [smem:[#allocation3 + $0x4]]  ;;  %p243_p5 = scmp.ne.s32.totalorder %s188_s5, %s242_s6 }
  0x15   :  { %vm96_vm3 = vcmp.eq.s32.totalorder %v316_v14, 1  ;;  %vm102_vm7 = vcmp.eq.s32.totalorder %v316_v14, 2  ;;  %s206_s27 = sld [smem:[#allocation3 + $0x5]]  ;;  %vm108_vm11 = vcmp.eq.s32.totalorder %v316_v14, 3  ;;  %vm114_vm15 = vcmp.eq.s32.totalorder %v316_v14, 4  ;;  %p247_p6 = scmp.lt.s32.totalorder %s188_s5, %s188_s5 }
  0x16   :  { %219 = vset.pattern.permute.xlu1 %v278_v3  ;;  %26 = vperm.xlu0 %217, %v22_v0   ;;  %v54_v11 = vadd.f32 %v52_v10, %v35_v9  ;;  %v43_v17 = vrot.slane %v23_v8, %v42_v15  ;;  %v32_v18 = vrot.slane %v23_v8, %v31_v16  ;;  %v93_v27 = vstv %s92_s1  ;;  %s207_s28 = sld [smem:[#allocation3 + $0x6]]  ;;  %p248_p7 = scmp.lt.s32.totalorder %s242_s6, %s242_s6 }
  0x17   :  { %v98_v29 = vstv %s202_s24  ;;  %vm94_vm2 = vcmp.eq.s32.totalorder %v90_v25, %v93_v27  ;;  %s208_s29 = sld [smem:[#allocation3 + $0x7]] }
  0x18   :  { %v57_v13 = vmax.f32 %v54_v11, 1e-24  ;;  %vm99_vm4 = vcmp.eq.s32.totalorder %v90_v25, %v98_v29  ;;  %v104_v32 = vstv %s203_s2  ;;  %vm326_vm5 = vmand %vm91_vm1, %vm94_vm2  ;;  %p249_p8 = por %p248_p7, %p247_p6 }
  0x19   :  { %vm332_vm6 = vmand %vm96_vm3, %vm99_vm4  ;;  %vm105_vm8 = vcmp.eq.s32.totalorder %v90_v25, %v104_v32  ;;  %v110_v38 = vstv %s204_s25  ;;  %vm120_vm4 = vcmp.eq.s32.totalorder %v316_v14, 5 }
  0x1a   :  { %vm101_vm9 = vmor %vm326_vm5, %vm332_vm6  ;;  %vm111_vm12 = vcmp.eq.s32.totalorder %v90_v25, %v110_v38  ;;  %v116_v40 = vstv %s205_s26  ;;  %p250_p9 = pnand %p249_p8, %p243_p5 }
  0x1b   :  { %vm106_vm10 = vmand %vm102_vm7, %vm105_vm8  ;;  %vm117_vm1 = vcmp.eq.s32.totalorder %v90_v25, %v116_v40  ;;  %v122_v41 = vstv %s206_s27  ;;  %vm126_vm8 = vcmp.eq.s32.totalorder %v316_v14, 6 }
  0x1c   :  { %vm107_vm13 = vmor %vm101_vm9, %vm106_vm10  ;;  %vm123_vm5 = vcmp.eq.s32.totalorder %v90_v25, %v122_v41  ;;  %v128_v42 = vstv %s207_s28 }
  0x1d   :  { %vm112_vm14 = vmand %vm108_vm11, %vm111_vm12  ;;  %vm129_vm9 = vcmp.eq.s32.totalorder %v90_v25, %v128_v42  ;;  %v134_v46 = vstv %s208_s29 }
  0x1e   :  { %vm113_vm2 = vmor %vm107_vm13, %vm112_vm14  ;;  %vm132_vm13 = vcmp.eq.s32.totalorder %v316_v14, 7  ;;  %vm135_vm14 = vcmp.eq.s32.totalorder %v90_v25, %v134_v46 }
  0x1f   :  { %vm118_vm3 = vmand %vm114_vm15, %vm117_vm1 }
  0x20   :  { %vm344_vm6 = vmor %vm113_vm2, %vm118_vm3 }
  0x21   :  { %vm348_vm7 = vmand %vm120_vm4, %vm123_vm5  ;;  %vm159_vm5 = vcmask 7168  }
  0x22   :  { %vm125_vm10 = vmor %vm344_vm6, %vm348_vm7 }
  0x23   :  { %vm130_vm11 = vmand %vm126_vm8, %vm129_vm9 }
  0x24   :  { %vm359_vm1 = vmor %vm125_vm10, %vm130_vm11 }
  0x25   :  { %vm364_vm2 = vmand %vm132_vm13, %vm135_vm14 }
  0x26   :  { %vm137_vm4 = vmor %vm359_vm1, %vm364_vm2 }
  0x84   :  { %v48_v4 = vpop.permute.xlu0 %47 }
  0x85   :  { %v50_v5 = vadd.f32 %v48_v4, %v34_v1 }
  0x87   :  { %v55_v6 = vmax.f32 %v50_v5, 1e-24 }
  0x89   :  { %220 = vrsqrt.f32 %v55_v6 }
  0x8a   :  { %222 = vrsqrt.f32 %v57_v13 }
  0x8d   :  { %v38_v19 = vpop.permute.xlu1 %37 }
  0x8e   :  { %v44_v21 = vmul.f32 %v43_v17, %v38_v19 }
  0x91   :  { %v27_v20 = vpop.permute.xlu0 %26 }
  0x92   :  { %v33_v22 = vmul.f32 %v32_v18, %v27_v20 }
  0x94   :  { %v45_v24 = vadd.f32 %v44_v21, %v33_v22 }
  0x96   :  { %v221_v7 = vpop.eup %220 }
  0x97   :  { %61 = vperm.xlu1 %219, %v221_v7   ;;  %v223_v23 = vpop.eup %222 }
  0x98   :  { %v68_v26 = vrot.slane %v223_v23, %v31_v16 }
 0x112   :  { %v62_v28 = vpop.permute.xlu1 %61 }
 0x113   :  { %v64_v30 = vmul.f32 %v62_v28, %v45_v24 }
 0x115   :  { %v321_v31 = vmul.f32 %v68_v26, %v64_v30 }
 0x117   :  { %v142_v33 = vsel %vm140_vm0, %v321_v31, -inf  ;;  %v70_v35 = vmul.f32 %v321_v31, %v321_v31  ;;  %v200_v51 = vadd.f32 0.99995, %v321_v31  ;;  %v80_v53 = vmul.f32 0.99995, %v321_v31 }
 0x118   :  { %143 = vmax.xlane.f32.xlu1 %v142_v33  ;;  %v201_v57 = vadd.f32 -9.999887e-05, %v321_v31  ;;  %v154_v2 = vsel %vm137_vm4, %v321_v31, 0.0 }
 0x119   :  { %v71_v37 = vsub.f32 1.0, %v70_v35  ;;  %vm84_vm3 = vcmp.gt.f32.partialorder %v200_v51, 0.0  ;;  %v155_v3 = vsel %vm140_vm0, %v154_v2, 0.0 }
 0x11b   :  { %v72_v39 = vmax.f32 %v71_v37, 0.0 }
 0x11d   :  { %224 = vrsqrt.f32 %v72_v39  ;;  %vm75_vm12 = vcmp.eq.f32.partialorder %v72_v39, inf  ;;  %v78_v48 = vand.u32 2147483648, %v72_v39  ;;  %vm77_vm15 = vcmp.eq.f32.partialorder %v72_v39, 0.0 }
 0x12a   :  { %v225_v45 = vpop.eup %224 }
 0x12b   :  { %v74_v47 = vmul.f32 %v225_v45, %v72_v39 }
 0x12d   :  { %v76_v49 = vsel %vm75_vm12, %v72_v39, %v74_v47 }
 0x12e   :  { %v79_v50 = vsel %vm77_vm15, %v78_v48, %v76_v49 }
 0x12f   :  { %v81_v54 = vmul.f32 0.009999833, %v79_v50 }
 0x131   :  { %v82_v56 = vsub.f32 %v80_v53, %v81_v54 }
 0x133   :  { %v86_v58 = vsel %vm84_vm3, %v82_v56, %v201_v57 }
 0x134   :  { %v138_v59 = vsel %vm137_vm4, %v86_v58, %v321_v31 }
 0x135   :  { %v139_v60 = vmul.f32 128.0, %v138_v59 }
 0x137   :  { %141 = vst.msk [vmem:[#allocation7] sm:$0xff] %vm140_vm0, %v139_v60 }
 0x1a1   :  { %v144_v61 = vpop.xlane.xlu1 %143 }
 0x1a2   :  { %v145_v62 = vsub.f32 %v321_v31, %v144_v61 }
 0x1a4   :  { %v146_v63 = vmul.f32 1.442695, %v145_v62 }
 0x1a6   :  { %226 = vpow2.f32 %v146_v63 }
 0x1b3   :  { %v227_v0 = vpop.eup %226 }
 0x1b4   :  { %v148_v1 = vsel %vm140_vm0, %v227_v0, 0.0 }
 0x1b5   :  { %149 = vadd.xlane.f32.xlu0 %v148_v1 }
 0x1b9   :  { %156 = vadd.xlane.f32.xlu0 %v155_v3 }
 0x23e   :  { %v150_v4 = vpop.xlane.xlu0 %149 }
 0x23f   :  { %228 = vlog2.f32 %v150_v4 }
 0x242   :  { %v157_v8 = vpop.xlane.xlu0 %156 }
 0x24c   :  { %v229_v5 = vpop.eup %228 }
 0x24d   :  { %v152_v6 = vmul.f32 0.6931472, %v229_v5 }
 0x24f   :  { %v153_v7 = vadd.f32 %v152_v6, %v144_v61 }
 0x251   :  { %v158_v9 = vsub.f32 %v153_v7, %v157_v8 }
 0x253   :  { %v160_v10 = vsel %vm159_vm5, %v158_v9, 0.0 }
 0x254   :  { %161 = vadd.xlane.f32.xlu1 %v160_v10 }
 0x255   :  { %253 = shalt.err (!%p250_p9)
}
 0x256   :  { %190 = dma.vmem_to_hbm [thread:$0]  %s188_s5, 128, %s389_s4, [#allocation5]  }
 0x257   :  { %s281_s11 = smov [#allocation4]  }
 0x2dd   :  { %v162_v11 = vpop.xlane.xlu1 %161 }
 0x2de   :  { %v163_v12 = vrot.slane %v162_v11, 4 }
 0x2e0   :  { %v164_v13 = vadd.f32 %v163_v12, %v162_v11 }
 0x2e2   :  { %v165_v14 = vrot.slane %v164_v13, 2 }
 0x2e4   :  { %v166_v15 = vadd.f32 %v165_v14, %v164_v13 }
 0x2e6   :  { %v167_v16 = vrot.slane %v166_v15, 1 }
 0x2e8   :  { %v168_v17 = vadd.f32 %v167_v16, %v166_v15 }
 0x2ea   :  { %209 = vpush %v168_v17 }
 0x31b   :  { %s210_s9 = spop %209 }
 0x31c   :  { %s170_s10 = smul.f32 0.125, %s210_s9 }
 0x31e   :  { %172 = sst [smem:[#allocation4]] %s170_s10 }
 0x31f   :  { %180 = dma.smem_to_hbm %s281_s11, 16, %s388_s3, [#allocation6]  }
 0x320   :  { %272 = dma.done.wait [#allocation6], 16  }
 0x321   :  { %273 = vsyncadd [#allocation6], 4294967280 }
 0x322   :  { %274 = dma.done.wait [#allocation5], 128  }
 0x323   :  { %275 = vsyncadd [#allocation5], 4294967168 }
 0x324   :  { %197 = sfence }
 0x325   :  { %198 = vsyncpa [#allocation5], 1 }
 0x326   :  { %199 = vsyncpa [#allocation6], 1 }

</bundles_post_ra>
